<compile_context>
chip_gen: v7x
topology: tpu7x:2x2x1
jax: 0.10.0
libtpu: 0.0.40
codegen_flags: <defaults>
</compile_context>

<pallas_src>
import functools

import jax
import jax.numpy as jnp
from jax.experimental import pallas as pl
from jax.experimental.pallas import tpu as pltpu


def _mha_kernel(h_ref, wqkv_ref, wo_ref, gamma_ref, beta_ref, o_ref, av_ref,
                *, n_head, d_head, eps):
    """One grid step = one batch element.  All refs are 2-D, lane dim = d_model."""
    hd = n_head * d_head

    # Single bf16 cast of the activations for all MXU work this step.
    hbf = h_ref[...].astype(jnp.bfloat16)                                 # [T, D]

    # Fused QKV projection: one MXU pass with N = 3*H*Dh.
    # (softmax scale is pre-folded into the Wq columns by the wrapper)
    qkv = jnp.dot(hbf, wqkv_ref[...],
                  preferred_element_type=jnp.float32).astype(jnp.bfloat16)  # [T, 3*H*Dh]

    # Per-head attention; only one [T, T] f32 score tile is live at a time.
    for n in range(n_head):
        q = qkv[:, n * d_head:(n + 1) * d_head]                           # [T, Dh] bf16
        k = qkv[:, hd + n * d_head: hd + (n + 1) * d_head]
        v = qkv[:, 2 * hd + n * d_head: 2 * hd + (n + 1) * d_head]

        # Scores: contract the d_head axes directly (A @ B^T form, no transpose).
        s = jax.lax.dot_general(q, k,
                                dimension_numbers=(((1,), (1,)), ((), ())),
                                preferred_element_type=jnp.float32)       # [T, T] f32
        s = s - jnp.max(s, axis=-1, keepdims=True)
        p = jnp.exp(s)                                                    # unnormalized probs

        # Deferred softmax normalization: P@V first, then scale the [T, Dh]
        # result by 1/rowsum (EUP reciprocal) instead of scaling the [T, T] tile.
        av = jnp.dot(p.astype(jnp.bfloat16), v,
                     preferred_element_type=jnp.float32)                  # [T, Dh] f32
        av = av * pl.reciprocal(jnp.sum(p, axis=-1, keepdims=True), approx=True)
        av_ref[:, n * d_head:(n + 1) * d_head] = av.astype(jnp.bfloat16)

    # One output projection with K = H*Dh (no per-head accumulator RMW),
    # residual add and post-LayerNorm, all in f32.
    attn_out = jnp.dot(av_ref[...], wo_ref[...],
                       preferred_element_type=jnp.float32)                # [T, D]
    x = h_ref[...].astype(jnp.float32) + attn_out
    mu = jnp.mean(x, axis=-1, keepdims=True)
    var = jnp.mean((x - mu) * (x - mu), axis=-1, keepdims=True)
    y = (x - mu) * jax.lax.rsqrt(var + eps)
    y = y * gamma_ref[...] + beta_ref[...]
    o_ref[...] = y.astype(o_ref.dtype)


def multi_head_attn(h_tbd, wq, wk, wv, wo, gamma, beta, *, n_head, d_head, eps=1e-5):
    """h_tbd: [T, B, d_model] (PyTorch layout).  Returns [T, B, d_model]."""
    T, B, D = h_tbd.shape
    hd = n_head * d_head
    scale = 1.0 / (d_head ** 0.5)
    f32 = jnp.float32

    # Native-layout view: [T, B, D] -> [T, B*D] is a free contiguous reshape
    # (no HBM transpose).  Each grid step owns the lane slice [T, b*D:(b+1)*D].
    h2 = h_tbd.reshape(T, B * D)

    # Fused QKV weight, pre-transposed for y = x @ W^T, softmax scale folded into
    # Wq (multiplied in f32 *before* the bf16 cast).  Column layout:
    # [ q heads | k heads | v heads ], each head contiguous over d_head.
    wqkv_t = jnp.concatenate(
        [wq.astype(f32).T * scale, wk.astype(f32).T, wv.astype(f32).T],
        axis=1).astype(jnp.bfloat16)                        # [D, 3*H*Dh]
    wo_t = wo.astype(f32).T.astype(jnp.bfloat16)            # [H*Dh, D]
    gamma2 = gamma.reshape(1, D)
    beta2 = beta.reshape(1, D)

    kernel = functools.partial(_mha_kernel, n_head=n_head, d_head=d_head, eps=eps)

    out2 = pl.pallas_call(
        kernel,
        out_shape=jax.ShapeDtypeStruct((T, B * D), h_tbd.dtype),
        grid=(B,),
        in_specs=[
            pl.BlockSpec((T, D), lambda b: (0, b)),         # h, lane slice of batch b
            pl.BlockSpec((D, 3 * hd), lambda b: (0, 0)),    # fused Wqkv^T (resident)
            pl.BlockSpec((hd, D), lambda b: (0, 0)),        # Wo^T         (resident)
            pl.BlockSpec((1, D), lambda b: (0, 0)),         # LN gamma
            pl.BlockSpec((1, D), lambda b: (0, 0)),         # LN beta
        ],
        out_specs=pl.BlockSpec((T, D), lambda b: (0, b)),
        scratch_shapes=[pltpu.VMEM((T, hd), jnp.bfloat16)], # attn_vec staging buffer
        compiler_params=pltpu.CompilerParams(
            dimension_semantics=("parallel",)),
        # TODO(synk): set vmem_limit_bytes per chip once T/D are realistic.
    )(h2, wqkv_t, wo_t, gamma2, beta2)

    return out2.reshape(T, B, D)


def _reference_f32(h_tbd, wq, wk, wv, wo, gamma, beta, *, n_head, d_head, eps=1e-5):
    """Pure-JAX f32 mirror of the PyTorch forward (mems=None, mask=None, post-LN, eval)."""
    T, B, D = h_tbd.shape
    scale = 1.0 / (d_head ** 0.5)
    hi = jax.lax.Precision.HIGHEST
    h = h_tbd.astype(jnp.float32)
    q = jnp.einsum('tbd,ed->tbe', h, wq, precision=hi).reshape(T, B, n_head, d_head)
    k = jnp.einsum('tbd,ed->tbe', h, wk, precision=hi).reshape(T, B, n_head, d_head)
    v = jnp.einsum('tbd,ed->tbe', h, wv, precision=hi).reshape(T, B, n_head, d_head)
    score = jnp.einsum('ibnd,jbnd->ijbn', q, k, precision=hi) * scale
    prob = jax.nn.softmax(score, axis=1)
    vec = jnp.einsum('ijbn,jbnd->ibnd', prob, v,
                     precision=hi).reshape(T, B, n_head * d_head)
    attn_out = jnp.einsum('tbe,de->tbd', vec, wo, precision=hi)
    x = h + attn_out
    mu = x.mean(-1, keepdims=True)
    var = ((x - mu) ** 2).mean(-1, keepdims=True)
    return ((x - mu) * jax.lax.rsqrt(var + eps) * gamma + beta).astype(h_tbd.dtype)


def _reference_bf16(h_tbd, wq, wk, wv, wo, gamma, beta, *, n_head, d_head, eps=1e-5):
    """Mirrors the kernel's precision strategy (bf16 MXU operands, f32 accumulation,
    scale folded into Wq, deferred softmax normalization) but with exact 1/x."""
    T, B, D = h_tbd.shape
    hd = n_head * d_head
    scale = 1.0 / (d_head ** 0.5)
    f32, bf = jnp.float32, jnp.bfloat16
    wqkv_t = jnp.concatenate(
        [wq.astype(f32).T * scale, wk.astype(f32).T, wv.astype(f32).T],
        axis=1).astype(bf)
    wo_t = wo.astype(f32).T.astype(bf)
    outs = []
    for b in range(B):
        hb = h_tbd[:, b, :].astype(f32)
        qkv = jnp.dot(hb.astype(bf), wqkv_t, preferred_element_type=f32).astype(bf)
        avs = []
        for n in range(n_head):
            q = qkv[:, n * d_head:(n + 1) * d_head]
            k = qkv[:, hd + n * d_head: hd + (n + 1) * d_head]
            v = qkv[:, 2 * hd + n * d_head: 2 * hd + (n + 1) * d_head]
            s = jnp.dot(q, k.T, preferred_element_type=f32)
            s = s - s.max(-1, keepdims=True)
            p = jnp.exp(s)
            av = jnp.dot(p.astype(bf), v, preferred_element_type=f32)
            av = av / p.sum(-1, keepdims=True)
            avs.append(av.astype(bf))
        av_all = jnp.concatenate(avs, axis=1)
        attn_out = jnp.dot(av_all, wo_t, preferred_element_type=f32)
        x = hb + attn_out
        mu = x.mean(-1, keepdims=True)
        var = ((x - mu) ** 2).mean(-1, keepdims=True)
        outs.append((x - mu) * jax.lax.rsqrt(var + eps) * gamma + beta)
    return jnp.stack(outs, axis=1).astype(h_tbd.dtype)


if __name__ == "__main__":
    # Small but lane-dense shapes (d_model is a multiple of 128 per the perf review).
    T, B = 16, 2
    d_model, n_head, d_head = 128, 4, 32

    key = jax.random.PRNGKey(0)
    k_h, k_q, k_kv, k_o, k_g, k_b = jax.random.split(key, 6)

    h = jax.random.normal(k_h, (T, B, d_model), dtype=jnp.float32)

    # Deterministic parameter init (PyTorch Linear-like uniform bounds).
    bound_q = 1.0 / (d_model ** 0.5)
    wq = jax.random.uniform(k_q, (n_head * d_head, d_model), jnp.float32, -bound_q, bound_q)
    wkv = jax.random.uniform(k_kv, (2 * n_head * d_head, d_model), jnp.float32, -bound_q, bound_q)
    wk, wv = wkv[: n_head * d_head], wkv[n_head * d_head:]
    bound_o = 1.0 / ((n_head * d_head) ** 0.5)
    wo = jax.random.uniform(k_o, (d_model, n_head * d_head), jnp.float32, -bound_o, bound_o)
    gamma = 1.0 + 0.1 * jax.random.normal(k_g, (d_model,), jnp.float32)
    beta = 0.1 * jax.random.normal(k_b, (d_model,), jnp.float32)

    out = multi_head_attn(h, wq, wk, wv, wo, gamma, beta, n_head=n_head, d_head=d_head)
    out = jax.block_until_ready(out)
    assert out.shape == (T, B, d_model)

    # Tight check against a reference with the same bf16-MXU / f32-accumulation,
    # scale-folded, deferred-normalization strategy (only the approx reciprocal differs).
    ref_bf16 = _reference_bf16(h, wq, wk, wv, wo, gamma, beta,
                               n_head=n_head, d_head=d_head)
    assert jnp.allclose(out, ref_bf16, atol=3e-3, rtol=3e-3), \
        "mismatch vs bf16-mirror reference"

    # Looser check against the exact f32 PyTorch-semantics reference
    # (tolerance bounded by bf16 quantization of the MXU operands).
    ref_f32 = _reference_f32(h, wq, wk, wv, wo, gamma, beta,
                             n_head=n_head, d_head=d_head)
    assert jnp.allclose(out, ref_f32, atol=3e-2, rtol=3e-2), \
        "mismatch vs f32 reference beyond bf16 tolerance"

    print("KERNEL_OK")
</pallas_src>

<mosaic_0001>
module attributes {stable_mosaic.version = 11 : i64} {
  func.func @_mha_kernel(%arg0: i32, %arg1: memref<16x128xf32, #tpu.memory_space<vmem>>, %arg2: memref<128x384xbf16, #tpu.memory_space<vmem>>, %arg3: memref<128x128xbf16, #tpu.memory_space<vmem>>, %arg4: memref<1x128xf32, #tpu.memory_space<vmem>>, %arg5: memref<1x128xf32, #tpu.memory_space<vmem>>, %arg6: memref<16x128xf32, #tpu.memory_space<vmem>>, %arg7: memref<16x128xbf16, #tpu.memory_space<vmem>>) attributes {dimension_semantics = [#tpu.dimension_semantics<parallel>], iteration_bounds = array<i64: 2>, scalar_prefetch = 0 : i64, scratch_operands = 1 : i64, tpu.core_type = #tpu.core_type<tc>, window_params = [{transform_indices = @transform_0, window_bounds = array<i64: 16, 128>}, {pipeline_mode = #tpu.pipeline_mode<synchronous>, transform_indices = @transform_1, window_bounds = array<i64: 128, 384>}, {pipeline_mode = #tpu.pipeline_mode<synchronous>, transform_indices = @transform_2, window_bounds = array<i64: 128, 128>}, {pipeline_mode = #tpu.pipeline_mode<synchronous>, transform_indices = @transform_3, window_bounds = array<i64: 1, 128>}, {pipeline_mode = #tpu.pipeline_mode<synchronous>, transform_indices = @transform_4, window_bounds = array<i64: 1, 128>}, {transform_indices = @transform_5, window_bounds = array<i64: 16, 128>}]} {
    %c0 = arith.constant 0 : index
    %c0_0 = arith.constant 0 : index
    %0 = vector.load %arg1[%c0, %c0_0] : memref<16x128xf32, #tpu.memory_space<vmem>>, vector<16x128xf32>
    %1 = arith.truncf %0 : vector<16x128xf32> to vector<16x128xbf16>
    %c0_1 = arith.constant 0 : index
    %c0_2 = arith.constant 0 : index
    %2 = vector.load %arg2[%c0_1, %c0_2] : memref<128x384xbf16, #tpu.memory_space<vmem>>, vector<128x384xbf16>
    %cst = arith.constant dense<0.000000e+00> : vector<16x384xf32>
    %3 = tpu.matmul %1, %2, %cst {dimension_numbers = #tpu.dot_dimension_numbers<[1], [0], [0], [1], [0, 0, 1, 1], [], []>} : vector<16x128xbf16>, vector<128x384xbf16>, vector<16x384xf32> -> vector<16x384xf32>
    %4 = arith.truncf %3 : vector<16x384xf32> to vector<16x384xbf16>
    %5 = vector.extract_strided_slice %4 {offsets = [0, 0], sizes = [16, 32], strides = [1, 1]} : vector<16x384xbf16> to vector<16x32xbf16>
    %6 = vector.extract_strided_slice %4 {offsets = [0, 128], sizes = [16, 32], strides = [1, 1]} : vector<16x384xbf16> to vector<16x32xbf16>
    %7 = vector.extract_strided_slice %4 {offsets = [0, 256], sizes = [16, 32], strides = [1, 1]} : vector<16x384xbf16> to vector<16x32xbf16>
    %cst_3 = arith.constant dense<0.000000e+00> : vector<16x16xf32>
    %8 = tpu.matmul %5, %6, %cst_3 {dimension_numbers = #tpu.dot_dimension_numbers<[1], [1], [0], [0], [0, 0, 1, 0], [], []>} : vector<16x32xbf16>, vector<16x32xbf16>, vector<16x16xf32> -> vector<16x16xf32>
    %cst_4 = arith.constant dense<0xFF800000> : vector<16xf32>
    %9 = vector.multi_reduction <maximumf>, %8, %cst_4 [1] : vector<16x16xf32> to vector<16xf32>
    %10 = vector.shape_cast %9 : vector<16xf32> to vector<16x1xf32>
    %11 = vector.broadcast %10 : vector<16x1xf32> to vector<16x16xf32>
    %12 = arith.subf %8, %11 : vector<16x16xf32>
    %13 = math.exp %12 : vector<16x16xf32>
    %14 = arith.truncf %13 : vector<16x16xf32> to vector<16x16xbf16>
    %cst_5 = arith.constant dense<0.000000e+00> : vector<16x32xf32>
    %15 = tpu.matmul %14, %7, %cst_5 {dimension_numbers = #tpu.dot_dimension_numbers<[1], [0], [0], [1], [0, 0, 1, 1], [], []>} : vector<16x16xbf16>, vector<16x32xbf16>, vector<16x32xf32> -> vector<16x32xf32>
    %cst_6 = arith.constant dense<0.000000e+00> : vector<16xf32>
    %16 = vector.multi_reduction <add>, %13, %cst_6 [1] : vector<16x16xf32> to vector<16xf32>
    %17 = vector.shape_cast %16 : vector<16xf32> to vector<16x1xf32>
    %18 = tpu.reciprocal %17 {approx = true} : vector<16x1xf32> -> vector<16x1xf32>
    %19 = vector.broadcast %18 : vector<16x1xf32> to vector<16x32xf32>
    %20 = arith.mulf %15, %19 : vector<16x32xf32>
    %21 = arith.truncf %20 : vector<16x32xf32> to vector<16x32xbf16>
    %c0_7 = arith.constant 0 : index
    %c0_8 = arith.constant 0 : index
    %22 = vector.load %arg7[%c0_7, %c0_8] : memref<16x128xbf16, #tpu.memory_space<vmem>>, vector<16x32xbf16>
    tpu.vector_store %arg7[%c0_7, %c0_8], %21 {strides = array<i32>} : memref<16x128xbf16, #tpu.memory_space<vmem>>, vector<16x32xbf16>,
    %23 = vector.extract_strided_slice %4 {offsets = [0, 32], sizes = [16, 32], strides = [1, 1]} : vector<16x384xbf16> to vector<16x32xbf16>
    %24 = vector.extract_strided_slice %4 {offsets = [0, 160], sizes = [16, 32], strides = [1, 1]} : vector<16x384xbf16> to vector<16x32xbf16>
    %25 = vector.extract_strided_slice %4 {offsets = [0, 288], sizes = [16, 32], strides = [1, 1]} : vector<16x384xbf16> to vector<16x32xbf16>
    %cst_9 = arith.constant dense<0.000000e+00> : vector<16x16xf32>
    %26 = tpu.matmul %23, %24, %cst_9 {dimension_numbers = #tpu.dot_dimension_numbers<[1], [1], [0], [0], [0, 0, 1, 0], [], []>} : vector<16x32xbf16>, vector<16x32xbf16>, vector<16x16xf32> -> vector<16x16xf32>
    %cst_10 = arith.constant dense<0xFF800000> : vector<16xf32>
    %27 = vector.multi_reduction <maximumf>, %26, %cst_10 [1] : vector<16x16xf32> to vector<16xf32>
    %28 = vector.shape_cast %27 : vector<16xf32> to vector<16x1xf32>
    %29 = vector.broadcast %28 : vector<16x1xf32> to vector<16x16xf32>
    %30 = arith.subf %26, %29 : vector<16x16xf32>
    %31 = math.exp %30 : vector<16x16xf32>
    %32 = arith.truncf %31 : vector<16x16xf32> to vector<16x16xbf16>
    %cst_11 = arith.constant dense<0.000000e+00> : vector<16x32xf32>
    %33 = tpu.matmul %32, %25, %cst_11 {dimension_numbers = #tpu.dot_dimension_numbers<[1], [0], [0], [1], [0, 0, 1, 1], [], []>} : vector<16x16xbf16>, vector<16x32xbf16>, vector<16x32xf32> -> vector<16x32xf32>
    %cst_12 = arith.constant dense<0.000000e+00> : vector<16xf32>
    %34 = vector.multi_reduction <add>, %31, %cst_12 [1] : vector<16x16xf32> to vector<16xf32>
    %35 = vector.shape_cast %34 : vector<16xf32> to vector<16x1xf32>
    %36 = tpu.reciprocal %35 {approx = true} : vector<16x1xf32> -> vector<16x1xf32>
    %37 = vector.broadcast %36 : vector<16x1xf32> to vector<16x32xf32>
    %38 = arith.mulf %33, %37 : vector<16x32xf32>
    %39 = arith.truncf %38 : vector<16x32xf32> to vector<16x32xbf16>
    %c0_13 = arith.constant 0 : index
    %c32 = arith.constant 32 : index
    %40 = vector.load %arg7[%c0_13, %c32] : memref<16x128xbf16, #tpu.memory_space<vmem>>, vector<16x32xbf16>
    tpu.vector_store %arg7[%c0_13, %c32], %39 {strides = array<i32>} : memref<16x128xbf16, #tpu.memory_space<vmem>>, vector<16x32xbf16>,
    %41 = vector.extract_strided_slice %4 {offsets = [0, 64], sizes = [16, 32], strides = [1, 1]} : vector<16x384xbf16> to vector<16x32xbf16>
    %42 = vector.extract_strided_slice %4 {offsets = [0, 192], sizes = [16, 32], strides = [1, 1]} : vector<16x384xbf16> to vector<16x32xbf16>
    %43 = vector.extract_strided_slice %4 {offsets = [0, 320], sizes = [16, 32], strides = [1, 1]} : vector<16x384xbf16> to vector<16x32xbf16>
    %cst_14 = arith.constant dense<0.000000e+00> : vector<16x16xf32>
    %44 = tpu.matmul %41, %42, %cst_14 {dimension_numbers = #tpu.dot_dimension_numbers<[1], [1], [0], [0], [0, 0, 1, 0], [], []>} : vector<16x32xbf16>, vector<16x32xbf16>, vector<16x16xf32> -> vector<16x16xf32>
    %cst_15 = arith.constant dense<0xFF800000> : vector<16xf32>
    %45 = vector.multi_reduction <maximumf>, %44, %cst_15 [1] : vector<16x16xf32> to vector<16xf32>
    %46 = vector.shape_cast %45 : vector<16xf32> to vector<16x1xf32>
    %47 = vector.broadcast %46 : vector<16x1xf32> to vector<16x16xf32>
    %48 = arith.subf %44, %47 : vector<16x16xf32>
    %49 = math.exp %48 : vector<16x16xf32>
    %50 = arith.truncf %49 : vector<16x16xf32> to vector<16x16xbf16>
    %cst_16 = arith.constant dense<0.000000e+00> : vector<16x32xf32>
    %51 = tpu.matmul %50, %43, %cst_16 {dimension_numbers = #tpu.dot_dimension_numbers<[1], [0], [0], [1], [0, 0, 1, 1], [], []>} : vector<16x16xbf16>, vector<16x32xbf16>, vector<16x32xf32> -> vector<16x32xf32>
    %cst_17 = arith.constant dense<0.000000e+00> : vector<16xf32>
    %52 = vector.multi_reduction <add>, %49, %cst_17 [1] : vector<16x16xf32> to vector<16xf32>
    %53 = vector.shape_cast %52 : vector<16xf32> to vector<16x1xf32>
    %54 = tpu.reciprocal %53 {approx = true} : vector<16x1xf32> -> vector<16x1xf32>
    %55 = vector.broadcast %54 : vector<16x1xf32> to vector<16x32xf32>
    %56 = arith.mulf %51, %55 : vector<16x32xf32>
    %57 = arith.truncf %56 : vector<16x32xf32> to vector<16x32xbf16>
    %c0_18 = arith.constant 0 : index
    %c64 = arith.constant 64 : index
    %58 = vector.load %arg7[%c0_18, %c64] : memref<16x128xbf16, #tpu.memory_space<vmem>>, vector<16x32xbf16>
    tpu.vector_store %arg7[%c0_18, %c64], %57 {strides = array<i32>} : memref<16x128xbf16, #tpu.memory_space<vmem>>, vector<16x32xbf16>,
    %59 = vector.extract_strided_slice %4 {offsets = [0, 96], sizes = [16, 32], strides = [1, 1]} : vector<16x384xbf16> to vector<16x32xbf16>
    %60 = vector.extract_strided_slice %4 {offsets = [0, 224], sizes = [16, 32], strides = [1, 1]} : vector<16x384xbf16> to vector<16x32xbf16>
    %61 = vector.extract_strided_slice %4 {offsets = [0, 352], sizes = [16, 32], strides = [1, 1]} : vector<16x384xbf16> to vector<16x32xbf16>
    %cst_19 = arith.constant dense<0.000000e+00> : vector<16x16xf32>
    %62 = tpu.matmul %59, %60, %cst_19 {dimension_numbers = #tpu.dot_dimension_numbers<[1], [1], [0], [0], [0, 0, 1, 0], [], []>} : vector<16x32xbf16>, vector<16x32xbf16>, vector<16x16xf32> -> vector<16x16xf32>
    %cst_20 = arith.constant dense<0xFF800000> : vector<16xf32>
    %63 = vector.multi_reduction <maximumf>, %62, %cst_20 [1] : vector<16x16xf32> to vector<16xf32>
    %64 = vector.shape_cast %63 : vector<16xf32> to vector<16x1xf32>
    %65 = vector.broadcast %64 : vector<16x1xf32> to vector<16x16xf32>
    %66 = arith.subf %62, %65 : vector<16x16xf32>
    %67 = math.exp %66 : vector<16x16xf32>
    %68 = arith.truncf %67 : vector<16x16xf32> to vector<16x16xbf16>
    %cst_21 = arith.constant dense<0.000000e+00> : vector<16x32xf32>
    %69 = tpu.matmul %68, %61, %cst_21 {dimension_numbers = #tpu.dot_dimension_numbers<[1], [0], [0], [1], [0, 0, 1, 1], [], []>} : vector<16x16xbf16>, vector<16x32xbf16>, vector<16x32xf32> -> vector<16x32xf32>
    %cst_22 = arith.constant dense<0.000000e+00> : vector<16xf32>
    %70 = vector.multi_reduction <add>, %67, %cst_22 [1] : vector<16x16xf32> to vector<16xf32>
    %71 = vector.shape_cast %70 : vector<16xf32> to vector<16x1xf32>
    %72 = tpu.reciprocal %71 {approx = true} : vector<16x1xf32> -> vector<16x1xf32>
    %73 = vector.broadcast %72 : vector<16x1xf32> to vector<16x32xf32>
    %74 = arith.mulf %69, %73 : vector<16x32xf32>
    %75 = arith.truncf %74 : vector<16x32xf32> to vector<16x32xbf16>
    %c0_23 = arith.constant 0 : index
    %c96 = arith.constant 96 : index
    %76 = vector.load %arg7[%c0_23, %c96] : memref<16x128xbf16, #tpu.memory_space<vmem>>, vector<16x32xbf16>
    tpu.vector_store %arg7[%c0_23, %c96], %75 {strides = array<i32>} : memref<16x128xbf16, #tpu.memory_space<vmem>>, vector<16x32xbf16>,
    %c0_24 = arith.constant 0 : index
    %c0_25 = arith.constant 0 : index
    %77 = vector.load %arg7[%c0_24, %c0_25] : memref<16x128xbf16, #tpu.memory_space<vmem>>, vector<16x128xbf16>
    %c0_26 = arith.constant 0 : index
    %c0_27 = arith.constant 0 : index
    %78 = vector.load %arg3[%c0_26, %c0_27] : memref<128x128xbf16, #tpu.memory_space<vmem>>, vector<128x128xbf16>
    %cst_28 = arith.constant dense<0.000000e+00> : vector<16x128xf32>
    %79 = tpu.matmul %77, %78, %cst_28 {dimension_numbers = #tpu.dot_dimension_numbers<[1], [0], [0], [1], [0, 0, 1, 1], [], []>} : vector<16x128xbf16>, vector<128x128xbf16>, vector<16x128xf32> -> vector<16x128xf32>
    %c0_29 = arith.constant 0 : index
    %c0_30 = arith.constant 0 : index
    %80 = vector.load %arg1[%c0_29, %c0_30] : memref<16x128xf32, #tpu.memory_space<vmem>>, vector<16x128xf32>
    %81 = arith.addf %80, %79 : vector<16x128xf32>
    %cst_31 = arith.constant dense<0.000000e+00> : vector<16xf32>
    %82 = vector.multi_reduction <add>, %81, %cst_31 [1] : vector<16x128xf32> to vector<16xf32>
    %83 = vector.shape_cast %82 : vector<16xf32> to vector<16x1xf32>
    %cst_32 = arith.constant 1.280000e+02 : f32
    %84 = vector.broadcast %cst_32 : f32 to vector<16x1xf32>
    %85 = arith.divf %83, %84 : vector<16x1xf32>
    %86 = vector.broadcast %85 : vector<16x1xf32> to vector<16x128xf32>
    %87 = arith.subf %81, %86 : vector<16x128xf32>
    %88 = vector.broadcast %85 : vector<16x1xf32> to vector<16x128xf32>
    %89 = arith.subf %81, %88 : vector<16x128xf32>
    %90 = arith.mulf %87, %89 : vector<16x128xf32>
    %cst_33 = arith.constant dense<0.000000e+00> : vector<16xf32>
    %91 = vector.multi_reduction <add>, %90, %cst_33 [1] : vector<16x128xf32> to vector<16xf32>
    %92 = vector.shape_cast %91 : vector<16xf32> to vector<16x1xf32>
    %cst_34 = arith.constant 1.280000e+02 : f32
    %93 = vector.broadcast %cst_34 : f32 to vector<16x1xf32>
    %94 = arith.divf %92, %93 : vector<16x1xf32>
    %95 = vector.broadcast %85 : vector<16x1xf32> to vector<16x128xf32>
    %96 = arith.subf %81, %95 : vector<16x128xf32>
    %cst_35 = arith.constant 9.99999974E-6 : f32
    %97 = vector.broadcast %cst_35 : f32 to vector<16x1xf32>
    %98 = arith.addf %94, %97 : vector<16x1xf32>
    %99 = math.rsqrt %98 : vector<16x1xf32>
    %100 = vector.broadcast %99 : vector<16x1xf32> to vector<16x128xf32>
    %101 = arith.mulf %96, %100 : vector<16x128xf32>
    %c0_36 = arith.constant 0 : index
    %c0_37 = arith.constant 0 : index
    %102 = vector.load %arg4[%c0_36, %c0_37] : memref<1x128xf32, #tpu.memory_space<vmem>>, vector<1x128xf32>
    %103 = vector.broadcast %102 : vector<1x128xf32> to vector<16x128xf32>
    %104 = arith.mulf %101, %103 : vector<16x128xf32>
    %c0_38 = arith.constant 0 : index
    %c0_39 = arith.constant 0 : index
    %105 = vector.load %arg5[%c0_38, %c0_39] : memref<1x128xf32, #tpu.memory_space<vmem>>, vector<1x128xf32>
    %106 = vector.broadcast %105 : vector<1x128xf32> to vector<16x128xf32>
    %107 = arith.addf %104, %106 : vector<16x128xf32>
    %c0_40 = arith.constant 0 : index
    %c0_41 = arith.constant 0 : index
    %108 = vector.load %arg6[%c0_40, %c0_41] : memref<16x128xf32, #tpu.memory_space<vmem>>, vector<16x128xf32>
    tpu.vector_store %arg6[%c0_40, %c0_41], %107 {strides = array<i32>} : memref<16x128xf32, #tpu.memory_space<vmem>>, vector<16x128xf32>,
    return
  }
  func.func @transform_0(%arg0: i32) -> (i32, i32) {
    %c0_i32 = arith.constant 0 : i32
    %c0_i32_0 = arith.constant 0 : i32
    return %c0_i32, %arg0 : i32, i32
  }
  func.func @transform_1(%arg0: i32) -> (i32, i32) {
    %c0_i32 = arith.constant 0 : i32
    %c0_i32_0 = arith.constant 0 : i32
    %c0_i32_1 = arith.constant 0 : i32
    return %c0_i32, %c0_i32_0 : i32, i32
  }
  func.func @transform_2(%arg0: i32) -> (i32, i32) {
    %c0_i32 = arith.constant 0 : i32
    %c0_i32_0 = arith.constant 0 : i32
    %c0_i32_1 = arith.constant 0 : i32
    return %c0_i32, %c0_i32_0 : i32, i32
  }
  func.func @transform_3(%arg0: i32) -> (i32, i32) {
    %c0_i32 = arith.constant 0 : i32
    %c0_i32_0 = arith.constant 0 : i32
    %c0_i32_1 = arith.constant 0 : i32
    return %c0_i32, %c0_i32_0 : i32, i32
  }
  func.func @transform_4(%arg0: i32) -> (i32, i32) {
    %c0_i32 = arith.constant 0 : i32
    %c0_i32_0 = arith.constant 0 : i32
    %c0_i32_1 = arith.constant 0 : i32
    return %c0_i32, %c0_i32_0 : i32, i32
  }
  func.func @transform_5(%arg0: i32) -> (i32, i32) {
    %c0_i32 = arith.constant 0 : i32
    %c0_i32_0 = arith.constant 0 : i32
    return %c0_i32, %arg0 : i32, i32
  }
}

</mosaic_0001>

<bundles_post_ra>
// kernel: tpu_custom_call.1
= control target key start
LH: loop header
LB: loop body
LE: loop exit
PB: predicated region body
PF: predicated region fallthrough
CT: control target
= control target key end

     0   :  { %s2185_s0 = inlined_call_operand.hbm [shape: f32[16,256], index: 0, kind: input, shape index: {}]   ;;  %s2186_s1 = inlined_call_operand.hbm [shape: bf16[128,384], index: 1, kind: input, shape index: {}]   ;;  %s2187_s2 = inlined_call_operand.hbm [shape: bf16[128,128], index: 2, kind: input, shape index: {}]   ;;  %s2188_s3 = inlined_call_operand.vmem [shape: f32[1,128], index: 3, kind: input, shape index: {}]   ;;  %s2189_s4 = inlined_call_operand.vmem [shape: f32[1,128], index: 4, kind: input, shape index: {}]   ;;  %s2190_s5 = inlined_call_operand.hbm [shape: f32[16,256], index: 5, kind: output, shape index: {}]  }
   0x1   :  { %2196 = sst [smem:[#allocation14_spill]] %s2186_s1 }
   0x2   :  { %10 = vsyncpa [#allocation4], 0 }
   0x3   :  { %12 = vsyncpa [#allocation4 + $0x1], 0 }
   0x4   :  { %13 = vsyncpa [#allocation7], 0 }
   0x5   :  { %14 = vsyncpa [#allocation5], 0 }
   0x6   :  { %16 = vsyncpa [#allocation5 + $0x1], 0  ;;  %s1832_s18 = smov 0   ;;  %s1834_s19 = smov 0  }
   0x7   :  { %s1836_s20 = smov 0   ;;  %s1838_s21 = smov 0  }
   0x8 LB: > { %s1853_s22 = sadd.s32 4294967295, %s1780_s21   ;;  %s1285_s23 = sadd.s32 4294967294, %s1780_s21   ;;  %s1780_s21 = sphi %s1838_s21, %s2220_s21   ;;  %s1776_s20 = sphi %s1836_s20, %s2219_s20   ;;  %s1772_s19 = sphi %s1834_s19, %s2218_s19   ;;  %s1768_s18 = sphi %s1832_s18, %s2217_s18  }
   0x9   : > { %s1857_s24 = sadd.s32 1, %s1780_s21   ;;  %s29_s25 = sadd.s32 1, %s1776_s20 }
   0xa   : > { %s26_s26 = ssub.s32 %s1780_s21, %s1857_s24  ;;  %p36_p0 = scmp.ne.s32.totalorder %s1776_s20, %s1772_s19 }
   0xb   : > { %p27_p1 = scmp.eq.s32.totalorder %s26_s26, 0  ;;  %p37_p2 = scmp.eq.s32.totalorder %s1780_s21, 0 }
   0xc   : > { %p42_p3 = scmp.ne.s32.totalorder %s1772_s19, %s1768_s18  ;;  %p2191_p4 = scmp.eq.s32.totalorder %s1853_s22, 0 }
   0xd   : > { %s1869_s27 = scalar_select %p27_p1, %s1776_s20, %s29_s25  }
   0xe   : > { %p1871_p5 = por %p37_p2, %p36_p0  ;;  %p1877_p6 = por %p2191_p4, %p42_p3 }
   0xf   : > { %2197 = sst [smem:[#allocation13_spill]] %s1869_s27  ;;  %p150_p7 = scmp.eq.s32.totalorder %s1853_s22, 1 }
  0x10   : > { %s2198_s28 = scalar_select %p1871_p5, 1, 0 }
  0x11   : > { %s2199_s29 = scalar_select %p1877_p6, 1, 0 }
  0x12   : > { %p156_p8 = scmp.eq.s32.totalorder %s1285_s23, 1  ;;  %p1286_p9 = scmp.ge.s32.totalorder %s1780_s21, 1 }
  0x13   : > { %p163_p10 = scmp.lt.s32.totalorder %s1780_s21, 3  ;;  %p1884_p11 = por %p150_p7, %p36_p0 }
  0x14   : > { %p1888_p12 = por %p156_p8, %p42_p3  ;;  %s1782_s8 = smov [#allocation6]  }
  0x15   : > { %s2200_s30 = scalar_select %p1884_p11, 1, 0 }
  0x16   : > { %s2201_s6 = scalar_select %p1888_p12, 1, 0 }
  0x17   : > { %p1892_p13 = pnand %p1286_p9, %p163_p10  ;;  %s175_s9 = sshll.u32 %s1782_s8, 4  ;;  %s176_s9 = int_to_ptr.vmem [resolvable:$true] %s175_s9 }
  0x18   : > { %s1783_s11 = smov [#allocation8]   ;;  %s2204_s1 = sld [smem:[#allocation14_spill]] }
  0x19   : > { %s2202_s7 = scalar_select %p1892_p13, 1, 0 }
  0x1a   : > { %p1477_p1 = pneg %p1892_p13  ;;  %s188_s12 = sshll.u32 %s1783_s11, 4  ;;  %s189_s12 = int_to_ptr.vmem [resolvable:$true] %s188_s12 }
  0x1c   : > { %p1900_p2 = pnand %p1477_p1, %p2191_p4 }
  0x1e   : > { %s1624_s15 = scalar_lea.hbm %s2204_s1, 3072  ;;  %p1626_p8 = pneg %p1900_p2 }
  0x1f   : > { %p1625_p7 = scmp.ne.s32.totalorder %s2204_s1, %s1624_s15  ;;  %p1631_p1 = scmp.lt.u32.totalorder %s1624_s15, %s2204_s1 }
  0x21   : > { %p1627_p9 = pnand %p1626_p8, %p1625_p7 }
  0x23   : > { %p1628_p10 = pneg %p1627_p9 }
  0x25   : > { %p1633_p0 = pnand %p1631_p1, %p1628_p10 }
  0x27   : > { %1636 = shalt.err (!%p1633_p0)
}
  0x28   : > { %s1637_s26 = scalar_lea.vmem %s176_s9, 3072  ;;  %p1645_p11 = scmp.lt.s32.totalorder %s176_s9, %s176_s9 }
  0x29   : > { %p1638_p4 = scmp.ne.s32.totalorder %s176_s9, %s1637_s26  ;;  %p1646_p6 = scmp.lt.s32.totalorder %s1637_s26, %s1637_s26 }
  0x2b   : > { %p1640_p3 = pnand %p1638_p4, %p1626_p8  ;;  %p1647_p13 = por %p1646_p6, %p1645_p11 }
  0x2d   : > { %p1641_p12 = pneg %p1640_p3 }
  0x2f   : > { %p1648_p5 = pnand %p1647_p13, %p1641_p12 }
  0x31   : > { %1651 = shalt.err (!%p1648_p5)
}
  0x32   : > { %s1784_s8 = smov 192   ;;  %s1785_s11 = smov 12  }
  0x33   : > { %1480 = dma.hbm_to_vmem [thread:$0]  (!%p1900_p2), %s2204_s1, 3072, %s176_s9, [#allocation7], %s1784_s8, %s1784_s8, %s1785_s11  }
  0x34   : > { %p2205_p0 = scmp.ne.s32.totalorder %s2198_s28, 0  ;;  %p2206_p4 = scmp.lt.s32.totalorder %s1780_s21, 2 }
  0x35   : > { %s208_s16 = sand.u32 1, %s1776_s20   ;;  %s1652_s25 = scalar_lea.hbm %s2187_s2, 1024 }
  0x36   : > { %p1932_p3 = pnand %p2206_p4, %p2205_p0  ;;  %p1653_p5 = scmp.ne.s32.totalorder %s2187_s2, %s1652_s25 }
  0x37   : > { %p1659_p12 = scmp.lt.u32.totalorder %s1652_s25, %s2187_s2 }
  0x38   : > { %s2207_s15 = scalar_select %p1932_p3, 1, 0 }
  0x39   : > { %p1655_p6 = pnand %p1653_p5, %p1626_p8 }
  0x3b   : > { %p1656_p11 = pneg %p1655_p6 }
  0x3d   : > { %p1661_p13 = pnand %p1659_p12, %p1656_p11 }
  0x3f   : > { %1664 = shalt.err (!%p1661_p13)
}
  0x40   : > { %s1665_s8 = scalar_lea.vmem %s189_s12, 1024  ;;  %p1673_p1 = scmp.lt.s32.totalorder %s189_s12, %s189_s12 }
  0x41   : > { %p1666_p7 = scmp.ne.s32.totalorder %s189_s12, %s1665_s8  ;;  %p1674_p0 = scmp.lt.s32.totalorder %s1665_s8, %s1665_s8 }
  0x43   : > { %p1668_p9 = pnand %p1666_p7, %p1626_p8  ;;  %p1675_p4 = por %p1674_p0, %p1673_p1 }
  0x45   : > { %p1669_p10 = pneg %p1668_p9 }
  0x47   : > { %p1676_p3 = pnand %p1675_p4, %p1669_p10 }
  0x49   : > { %1679 = shalt.err (!%p1676_p3)
}
  0x4a   : > { %s1786_s27 = smov 64   ;;  %s1787_s11 = smov 4  }
  0x4b   : > { %1483 = dma.hbm_to_vmem [thread:$0]  (!%p1900_p2), %s2187_s2, 1024, %s189_s12, [#allocation7], %s1786_s27, %s1786_s27, %s1787_s11  }
  0x4c   : > { %s1290_s17 = sshll.u32 %s208_s16, 4  ;;  %s1291_s23 = sshll.u32 %s1780_s21, 7 }
  0x4d   : > { %s1961_s28 = scalar_lea.hbm %s2185_s0, %s1291_s23  ;;  %s212_s9 = scalar_lea.vmem [#allocation3], %s1290_s17 }
  0x4e   : > { %s218_s8 = sshll.u32 %s212_s9, 4  ;;  %s1965_s10 = scalar_lea.sflag [#allocation4], %s208_s16  ;;  %s1963_s8 = int_to_ptr.vmem [resolvable:$true] %s218_s8 }
  0x4f   : > { %s1680_s1 = scalar_lea.hbm %s1961_s28, 256  ;;  %p2208_p2 = scmp.ne.s32.totalorder %s2207_s15, 0 }
  0x50   : > { %p1681_p8 = scmp.ne.s32.totalorder %s1961_s28, %s1680_s1  ;;  %s1685_s11 = scalar_lea.hbm %s2185_s0, 512 }
  0x51   : > { %p1682_p3 = pneg %p2208_p2  ;;  %p1686_p11 = scmp.lt.u32.totalorder %s1961_s28, %s2185_s0 }
  0x52   : > { %p1687_p12 = scmp.lt.u32.totalorder %s1685_s11, %s1680_s1  ;;  %p1689_p7 = scmp.lt.u32.totalorder %s1680_s1, %s1961_s28 }
  0x53   : > { %p1683_p5 = pnand %p1682_p3, %p1681_p8 }
  0x54   : > { %p1688_p13 = por %p1687_p12, %p1686_p11 }
  0x55   : > { %p1684_p6 = pneg %p1683_p5 }
  0x56   : > { %p1690_p9 = por %p1689_p7, %p1688_p13 }
  0x58   : > { %p1691_p10 = pnand %p1690_p9, %p1684_p6 }
  0x5a   : > { %1694 = shalt.err (!%p1691_p10)
}
  0x5b   : > { %s1695_s16 = scalar_lea.vmem %s1963_s8, 256  ;;  %s1788_s17 = smov [#allocation3]  }
  0x5c   : > { %p1696_p1 = scmp.ne.s32.totalorder %s1963_s8, %s1695_s16  ;;  %s1700_s23 = sshll.u32 %s1788_s17, 4  ;;  %s1701_s23 = int_to_ptr.vmem [resolvable:$false] %s1700_s23 }
  0x5d   : > { %s1702_s25 = scalar_lea.vmem %s1701_s23, 512  ;;  %p1703_p8 = scmp.lt.s32.totalorder %s1963_s8, %s1701_s23 }
  0x5e   : > { %p1698_p0 = pnand %p1696_p1, %p1682_p3  ;;  %p1704_p5 = scmp.lt.s32.totalorder %s1702_s25, %s1695_s16 }
  0x60   : > { %p1699_p4 = pneg %p1698_p0  ;;  %p1705_p11 = por %p1704_p5, %p1703_p8 }
  0x62   : > { %p1706_p12 = pnand %p1705_p11, %p1699_p4 }
  0x64   : > { %1709 = shalt.err (!%p1706_p12)
}
  0x65   : > { %s1789_s1 = smov 256   ;;  %s1790_s26 = smov 128  }
  0x66   : > { %s1791_s9 = smov 8   ;;  %p2209_p3 = scmp.ne.s32.totalorder %s2202_s7, 0 }
  0x67   : > { %1487 = dma.hbm_to_vmem [thread:$0]  (!%p2208_p2), %s1961_s28, 256, %s1963_s8, %s1965_s10, %s1789_s1, %s1790_s26, %s1791_s9  }
  0x68   : > { %230 = sbr.rel (%p2209_p3) target bundleno = 2032 (0x7f0), region = 40  ;;  %s1996_s12 = sand.u32 (!%p2209_p3), 1, %s1772_s19  }
  0x69   : > { %s1293_s27 = sshll.u32 (!%p2209_p3), %s1996_s12, 4  ;;  %s233_s11 = scalar_lea.sflag (!%p2209_p3), [#allocation4], %s1996_s12 }
  0x6a   : > { %s2002_s13 = scalar_lea.vmem (!%p2209_p3), [#allocation3], %s1293_s27  ;;  %p2210_p6 = scmp.ne.s32.totalorder (!%p2209_p3), %s2199_s29, 0 }
  0x6f   : > { %1755 = dma.done.wait (%p2210_p6), %s233_s11, 256  }
  0x70   : > { %1757 = vsyncadd (%p2210_p6), %s233_s11, 4294967040  ;;  %p2211_p2 = scmp.eq.s32.totalorder %s1853_s22, 0 }
  0x72   : > { %1759 = dma.done.wait (%p2211_p2), [#allocation7], 4096   ;;  %p2212_p13 = pmov %p2211_p2 }
  0x73   : > { %v1792_v0 = vmov 0   ;;  %v1793_v1 = vmov 0.0   ;;  %v1548_v2 = vld [vmem:[#allocation6 + $0x4] ss:$12 sps:$4 sm:$0xff]   ;;  %v1550_v3 = vld [vmem:[#allocation6] ss:$12 sps:$4 sm:$0xff]  }
  0x74   : > { %1761 = vsyncadd (%p2212_p13), [#allocation7], 4294963200  ;;  %467 = vmatprep.mubr.bf16.mxu0 %v1792_v0  ;;  %1377 = vmatprep.subr.bf16.mxu1 %v1793_v1  ;;  %v1551_v4 = vld [vmem:[#allocation6 + $0x1c] ss:$12 sps:$4 sm:$0xff]   ;;  %v1553_v5 = vld [vmem:[#allocation6 + $0x18] ss:$12 sps:$4 sm:$0xff]  }
  0x75   : > { %435 = vmatprep.subr.bf16.mxu0 %v1548_v2  ;;  %v1554_v6 = vld [vmem:[#allocation6 + $0x34] ss:$12 sps:$4 sm:$0xff]   ;;  %v1556_v7 = vld [vmem:[#allocation6 + $0x30] ss:$12 sps:$4 sm:$0xff]   ;;  %v1557_v8 = vld [vmem:[#allocation6 + $0x4c] ss:$12 sps:$4 sm:$0xff]  }
  0x76   : > { %436 = vmatpush1.bf16.msra.mxu0 %v1550_v3  ;;  %v1559_v9 = vld [vmem:[#allocation6 + $0x48] ss:$12 sps:$4 sm:$0xff]   ;;  %v1560_v10 = vld [vmem:[#allocation6 + $0x64] ss:$12 sps:$4 sm:$0xff]   ;;  %v1573_v12 = vld [vmem:[#allocation6 + $0x20] ss:$12 sps:$4 sm:$0xff]  }
  0x77   : > { %437 = vmatprep.subr.bf16.mxu0 %v1551_v4  ;;  %v1572_v11 = vld [vmem:[#allocation6 + $0x8] ss:$12 sps:$4 sm:$0xff]   ;;  %v1562_v13 = vld [vmem:[#allocation6 + $0x60] ss:$12 sps:$4 sm:$0xff]   ;;  %v1565_v15 = vld [vmem:[#allocation6 + $0x78] ss:$12 sps:$4 sm:$0xff]  }
  0x78   : > { %1378 = vmatpush3.bf16.msra.mxu1 %v1572_v11  ;;  %v1563_v14 = vld [vmem:[#allocation6 + $0x7c] ss:$12 sps:$4 sm:$0xff]   ;;  %v1574_v16 = vld [vmem:[#allocation6 + $0x38] ss:$12 sps:$4 sm:$0xff]   ;;  %v1566_v17 = vld [vmem:[#allocation6 + $0x94] ss:$12 sps:$4 sm:$0xff]  }
  0x79   : > { %1379 = vmatprep.subr.bf16.mxu1 %v1793_v1  ;;  %v1575_v18 = vld [vmem:[#allocation6 + $0x50] ss:$12 sps:$4 sm:$0xff]   ;;  %v1569_v20 = vld [vmem:[#allocation6 + $0xac] ss:$12 sps:$4 sm:$0xff]   ;;  %v1576_v21 = vld [vmem:[#allocation6 + $0x68] ss:$12 sps:$4 sm:$0xff]  }
  0x7a   : > { %438 = vmatpush1.bf16.msra.mxu0 %v1553_v5  ;;  %v1568_v19 = vld [vmem:[#allocation6 + $0x90] ss:$12 sps:$4 sm:$0xff]   ;;  %v1571_v22 = vld [vmem:[#allocation6 + $0xa8] ss:$12 sps:$4 sm:$0xff]   ;;  %v1577_v26 = vld [vmem:[#allocation6 + $0x80] ss:$12 sps:$4 sm:$0xff]  }
  0x7b   : > { %439 = vmatprep.subr.bf16.mxu0 %v1554_v6  ;;  %v2017_v23 = vld [vmem:[%s2002_s13] sm:$0xff]  ;;  %v2020_v24 = vld [vmem:[%s2002_s13 + $0x8] sm:$0xff]  ;;  %vm1794_vm0 = vmmov 0   ;;  %vm522_vm1 = vcmask 261120   ;;  %s1795_s29 = smov 96   ;;  %s1796_s7 = smov 64  }
  0x7c   : > { %1380 = vmatpush3.bf16.msra.mxu1 %v1573_v12  ;;  %v274_v25 = vpack.c.bf16 %v2020_v24, %v2017_v23  ;;  %v1578_v27 = vld [vmem:[#allocation6 + $0x98] ss:$12 sps:$4 sm:$0xff]   ;;  %v1579_v28 = vld [vmem:[#allocation6 + $0xb0] ss:$12 sps:$4 sm:$0xff]   ;;  %1393 = vmatprep.mubr.msk.bf16.mxu1 %vm1794_vm0, %v1793_v1  ;;  %s1797_s15 = smov 32   ;;  %vm570_vm2 = vcmask 130048  }
  0x7d   : > { %1381 = vmatprep.subr.bf16.mxu1 %v1793_v1  ;;  %vm769_vm3 = vcmask 523520   ;;  %vm897_vm4 = vcmask 785920   ;;  %vm1025_vm5 = vcmask 1048320   ;;  %s1340_s16 = sshll.u32 %s1853_s22, 7  ;;  %s270_s17 = scalar_lea.vmem [#allocation9], %s1293_s27 }
  0x7e   : > { %440 = vmatpush1.bf16.msra.mxu0 %v1556_v7  ;;  %s1193_s23 = sshll.u32 %s270_s17, 4  ;;  %s2139_s26 = scalar_lea.hbm %s2190_s5, %s1340_s16  ;;  %s2141_s23 = int_to_ptr.vmem [resolvable:$true] %s1193_s23 }
  0x7f   : > { %441 = vmatprep.subr.bf16.mxu0 %v1557_v8  ;;  %s1181_s22 = scalar_lea.sflag [#allocation5], %s1996_s12  ;;  %s1710_s9 = scalar_lea.vmem %s2141_s23, 256 }
  0x80   : > { %1382 = vmatpush3.bf16.msra.mxu1 %v1574_v16  ;;  %p1711_p7 = scmp.ne.s32.totalorder %s2141_s23, %s1710_s9  ;;  %p2213_p9 = scmp.ne.s32.totalorder %s2200_s30, 0 }
  0x81   : > { %1383 = vmatprep.subr.bf16.mxu1 %v1793_v1  ;;  %s1798_s27 = smov [#allocation9]  }
  0x82   : > { %442 = vmatpush1.bf16.msra.mxu0 %v1559_v9  ;;  %p1712_p10 = pnand %p1711_p7, %p2213_p9  ;;  %s1714_s11 = sshll.u32 %s1798_s27, 4  ;;  %s1715_s11 = int_to_ptr.vmem [resolvable:$false] %s1714_s11 }
  0x83   : > { %443 = vmatprep.subr.bf16.mxu0 %v1560_v10  ;;  %s1716_s13 = scalar_lea.vmem %s1715_s11, 512  ;;  %p1717_p0 = scmp.lt.s32.totalorder %s2141_s23, %s1715_s11 }
  0x84   : > { %1384 = vmatpush3.bf16.msra.mxu1 %v1575_v18  ;;  %p1713_p1 = pneg %p1712_p10  ;;  %p1718_p4 = scmp.lt.s32.totalorder %s1716_s13, %s1710_s9 }
  0x85   : > { %1385 = vmatprep.subr.bf16.mxu1 %v1793_v1 }
  0x86   : > { %444 = vmatpush1.bf16.msra.mxu0 %v1562_v13  ;;  %p1719_p8 = por %p1718_p4, %p1717_p0 }
  0x87   : > { %445 = vmatprep.subr.bf16.mxu0 %v1563_v14 }
  0x88   : > { %1386 = vmatpush3.bf16.msra.mxu1 %v1576_v21  ;;  %p1720_p5 = pnand %p1719_p8, %p1713_p1 }
  0x89   : > { %1387 = vmatprep.subr.bf16.mxu1 %v1793_v1 }
  0x8a   : > { %446 = vmatpush1.bf16.msra.mxu0 %v1565_v15 }
  0x8b   : > { %447 = vmatprep.subr.bf16.mxu0 %v1566_v17 }
  0x8c   : > { %1388 = vmatpush3.bf16.msra.mxu1 %v1577_v26 }
  0x8d   : > { %1389 = vmatprep.subr.bf16.mxu1 %v1793_v1 }
  0x8e   : > { %448 = vmatpush1.bf16.msra.mxu0 %v1568_v19 }
  0x8f   : > { %449 = vmatprep.subr.bf16.mxu0 %v1569_v20 }
  0x90   : > { %1390 = vmatpush3.bf16.msra.mxu1 %v1578_v27 }
  0x91   : > { %1391 = vmatprep.subr.bf16.mxu1 %v1793_v1 }
  0x92   : > { %450 = vmatpush1.bf16.msra.mxu0 %v1571_v22 }
  0x93   : > { %1421 = vmatprep.subr.bf16.mxu0 %v1793_v1 }
  0x94   : > { %1392 = vmatpush3.bf16.msra.mxu1 %v1579_v28 }
  0x95   : > { %468 = vmatmul.mubr.bf16.vlgmr.msra.gmra.mrb[0].mxu0 %v274_v25  ;;  %1397 = vmatprep.subr.bf16.mxu1 %v1793_v1 }
  0x96   : > { %1423 = vmatprep.mubr.msk.bf16.mxu0 %vm1794_vm0, %v1793_v1 }
  0x97   : > { %1394 = vmatmul.mubr.bf16.vlgmr.msra.gmra.mrb[0].mxu1 %v274_v25 }
  0x98   : > { %1399 = vmatprep.mubr.msk.bf16.mxu1 %vm1794_vm0, %v1793_v1 }
 0x168   : > { %v469_v29 = vpop.f32.mrb[0].mxu0 }
 0x169   : > { %v471_v30 = vpop.f32.mrb[1].mxu0 }
 0x16a   : > { %v473_v31 = vpop.f32.mrb[2].mxu0  ;;  %v512_v36 = vpop.f32.mrb[0].mxu1 }
 0x16b   : > { %v519_v32 = vpack.c.bf16 %v473_v31, %v469_v29  ;;  %v475_v33 = vpop.f32.mrb[3].mxu0  ;;  %v1395_v37 = vpop.f32.mrb[1].mxu1 }
 0x16c   : > { %v520_v34 = vpack.c.bf16 %v475_v33, %v471_v30  ;;  %v515_v38 = vpop.f32.mrb[2].mxu1 }
 0x16d   : > { %v2046_v39 = vpack.c.bf16 %v515_v38, %v512_v36  ;;  %v1396_v40 = vpop.f32.mrb[3].mxu1 }
 0x16e   : > { %644 = vrot.lane.b32.xlu1 %v520_v34, %s1795_s29  ;;  %v527_v35 = vsel %vm522_vm1, %v520_v34, 0 }
 0x16f   : > { %1398 = vmatpush3.bf16.xpose.msra.mxu1 %v527_v35 }
 0x170   : > { %1403 = vmatprep.subr.bf16.mxu1 %v1793_v1 }
 0x172   : > { %641 = vrot.lane.b32.xlu1 %v519_v32, %s1795_s29 }
 0x176   : > { %771 = vrot.lane.b32.xlu1 %v519_v32, %s1796_s7  ;;  %1400 = vmatmul.mubr.msk.bf16.vlgmr.msra.gmra.mrb[4].mxu1 %vm522_vm1, %v519_v32 }
 0x177   : > { %1405 = vmatprep.mubr.msk.bf16.mxu1 %vm1794_vm0, %v1793_v1  ;;  %1404 = vmatpush3.bf16.msra.mxu1 %v2046_v39 }
 0x178   : > { %1409 = vmatprep.subr.bf16.mxu1 %v1793_v1 }
 0x17a   : > { %901 = vrot.lane.b32.xlu1 %v520_v34, %s1797_s15 }
 0x17e   : > { %899 = vrot.lane.b32.xlu1 %v519_v32, %s1797_s15 }
 0x1e0   : > { %v645_v47 = vpop.permute.xlu1 %644 }
 0x1e1   : > { %v650_v63 = vsel %vm522_vm1, %v645_v47, 0 }
 0x1e4   : > { %v642_v50 = vpop.permute.xlu1 %641 }
 0x1e8   : > { %v772_v55 = vpop.permute.xlu1 %771 }
 0x1ec   : > { %v902_v58 = vpop.permute.xlu1 %901 }
 0x1ed   : > { %v907_v59 = vsel %vm522_vm1, %v902_v58, 0 }
 0x1f0   : > { %v900_v0 = vpop.permute.xlu1 %899 }
 0x249   : > { %v563_v41 = vpop.f32.mrb[4].mxu1 }
 0x24a   : > { %v1401_v42 = vpop.f32.mrb[5].mxu1  ;;  %v571_v43 = vsel %vm570_vm2, %v563_v41, -inf }
 0x24b   : > { %572 = vmax.xlane.f32.xlu0 %v571_v43  ;;  %v566_v44 = vpop.f32.mrb[6].mxu1 }
 0x24c   : > { %v1402_v45 = vpop.f32.mrb[7].mxu1  ;;  %v574_v46 = vsel %vm570_vm2, %v566_v44, -inf }
 0x24f   : > { %575 = vmax.xlane.f32.xlu0 %v574_v46 }
 0x265   : > { %773 = vrot.lane.b32.xlu0 %v520_v34, %s1796_s7 }
 0x2d8   : > { %v573_v48 = vpop.xlane.xlu0 %572 }
 0x2d9   : > { %v577_v49 = vsub.f32 %v563_v41, %v573_v48 }
 0x2db   : > { %v579_v51 = vmul.f32 1.442695, %v577_v49 }
 0x2dc   : > { %v576_v52 = vpop.xlane.xlu0 %575 }
 0x2dd   : > { %v578_v53 = vsub.f32 %v566_v44, %v576_v52  ;;  %1588 = vpow2.f32 %v579_v51 }
 0x2df   : > { %v581_v54 = vmul.f32 1.442695, %v578_v53 }
 0x2e0   : > { %v774_v56 = vpop.permute.xlu0 %773 }
 0x2e1   : > { %1590 = vpow2.f32 %v581_v54  ;;  %v779_v57 = vsel %vm522_vm1, %v774_v56, 0 }
 0x2e2   : > { %1422 = vmatpush3.bf16.xpose.msra.mxu0 %v779_v57 }
 0x2e3   : > { %1433 = vmatprep.subr.bf16.mxu0 %v1793_v1 }
 0x2e7   : > { %v2057_v60 = vpop.eup %1588 }
 0x2e9   : > { %1424 = vmatmul.mubr.msk.bf16.vlgmr.msra.gmra.mrb[4].mxu0 %vm522_vm1, %v772_v55 }
 0x2ea   : > { %1434 = vmatpush3.bf16.xpose.msra.mxu0 %v907_v59  ;;  %1435 = vmatprep.mubr.msk.bf16.mxu0 %vm1794_vm0, %v1793_v1 }
 0x2eb   : > { %v2061_v61 = vpop.eup %1590  ;;  %1445 = vmatprep.subr.bf16.mxu0 %v1793_v1 }
 0x2ec   : > { %v583_v62 = vpack.c.bf16 %v2061_v61, %v2057_v60 }
 0x2ee   : > { %1406 = vmatmul.mubr.msk.bf16.vlgmr.msra.gmra.mrb[8].mxu1 %vm570_vm2, %v583_v62 }
 0x2ef   : > { %1410 = vmatpush3.bf16.xpose.msra.mxu1 %v650_v63  ;;  %1411 = vmatprep.mubr.msk.bf16.mxu1 %vm1794_vm0, %v1793_v1  ;;  %v631_v63 = vsel %vm570_vm2, %v2061_v61, 0.0 }
 0x2f0   : > { %1415 = vmatprep.subr.bf16.mxu1 %v1793_v1 }
 0x2f1   : > { %1436 = vmatmul.mubr.msk.bf16.vlgmr.msra.gmra.mrb[8].mxu0 %vm522_vm1, %v900_v0  ;;  %v628_v0 = vsel %vm570_vm2, %v2057_v60, 0.0 }
 0x2f2   : > { %1461 = vmatprep.mubr.msk.bf16.mxu0 %vm1794_vm0, %v1793_v1 }
 0x2f6   : > { %1412 = vmatmul.mubr.msk.bf16.vlgmr.msra.gmra.mrb[12].mxu1 %vm522_vm1, %v642_v50 }
 0x2f7   : > { %1417 = vmatprep.mubr.msk.bf16.mxu1 %vm1794_vm0, %v1793_v1 }
 0x3bc   : > { %v815_v2 = vpop.f32.mrb[4].mxu0 }
 0x3bd   : > { %v1425_v3 = vpop.f32.mrb[5].mxu0  ;;  %v822_v4 = vsel %vm570_vm2, %v815_v2, -inf }
 0x3be   : > { %823 = vmax.xlane.f32.xlu1 %v822_v4  ;;  %v818_v5 = vpop.f32.mrb[6].mxu0  ;;  %v1580_v3 = vld [vmem:[#allocation8] sm:$0xff]   ;;  %v1581_v4 = vld [vmem:[#allocation8 + $0x8] sm:$0xff]  }
 0x3bf   : > { %v1426_v6 = vpop.f32.mrb[7].mxu0  ;;  %v825_v8 = vsel %vm570_vm2, %v818_v5, -inf  ;;  %1446 = vmatpush3.bf16.msra.mxu0 %v1580_v3 }
 0x3c0   : > { %1447 = vmatprep.subr.bf16.mxu0 %v1793_v1 }
 0x3c1   : > { %v2078_v7 = vpop.f32.mrb[8].mxu1 }
 0x3c2   : > { %826 = vmax.xlane.f32.xlu1 %v825_v8  ;;  %v1407_v9 = vpop.f32.mrb[9].mxu1 }
 0x3c3   : > { %v2081_v10 = vpop.f32.mrb[10].mxu1  ;;  %1448 = vmatpush3.bf16.msra.mxu0 %v1581_v4 }
 0x3c4   : > { %v1408_v11 = vpop.f32.mrb[11].mxu1  ;;  %v943_v12 = vpop.f32.mrb[8].mxu0  ;;  %1449 = vmatprep.subr.bf16.mxu0 %v1793_v1 }
 0x3c5   : > { %v1437_v13 = vpop.f32.mrb[9].mxu0  ;;  %v950_v14 = vsel %vm570_vm2, %v943_v12, -inf }
 0x3c6   : > { %951 = vmax.xlane.f32.xlu0 %v950_v14  ;;  %v946_v15 = vpop.f32.mrb[10].mxu0 }
 0x3c7   : > { %v1438_v16 = vpop.f32.mrb[11].mxu0  ;;  %v953_v17 = vsel %vm570_vm2, %v946_v15, -inf }
 0x3c8   : > { %954 = vmax.xlane.f32.xlu1 %v953_v17 }
 0x3c9   : > { %v686_v18 = vpop.f32.mrb[12].mxu1 }
 0x3ca   : > { %v1413_v19 = vpop.f32.mrb[13].mxu1  ;;  %v693_v20 = vsel %vm570_vm2, %v686_v18, -inf }
 0x3cb   : > { %v689_v21 = vpop.f32.mrb[14].mxu1  ;;  %v1583_v19 = vld [vmem:[#allocation8 + $0x18] sm:$0xff]  }
 0x3cc   : > { %694 = vmax.xlane.f32.xlu1 %v693_v20  ;;  %v1414_v22 = vpop.f32.mrb[15].mxu1  ;;  %v696_v25 = vsel %vm570_vm2, %v689_v21, -inf }
 0x3cd   : > { %697 = vmax.xlane.f32.xlu0 %v696_v25  ;;  %v1584_v25 = vld [vmem:[#allocation8 + $0x20] sm:$0xff]  }
 0x3dd   : > { %835 = vrot.lane.b32.xlu1 %v2046_v39, %s1796_s7 }
 0x3e1   : > { %963 = vrot.lane.b32.xlu1 %v2046_v39, %s1797_s15 }
 0x3e3   : > { %707 = vrot.lane.b32.xlu0 %v2046_v39, %s1795_s29 }
 0x44b   : > { %v824_v26 = vpop.xlane.xlu1 %823 }
 0x44c   : > { %v828_v27 = vsub.f32 %v815_v2, %v824_v26 }
 0x44e   : > { %v830_v28 = vmul.f32 1.442695, %v828_v27 }
 0x44f   : > { %v827_v29 = vpop.xlane.xlu1 %826 }
 0x450   : > { %1592 = vpow2.f32 %v830_v28  ;;  %v829_v30 = vsub.f32 %v818_v5, %v827_v29  ;;  %v1585_v29 = vld [vmem:[#allocation8 + $0x28] sm:$0xff]  }
 0x452   : > { %v832_v31 = vmul.f32 1.442695, %v829_v30 }
 0x453   : > { %v952_v32 = vpop.xlane.xlu0 %951 }
 0x454   : > { %1594 = vpow2.f32 %v832_v31  ;;  %v956_v33 = vsub.f32 %v943_v12, %v952_v32 }
 0x455   : > { %v955_v34 = vpop.xlane.xlu1 %954 }
 0x456   : > { %v958_v35 = vmul.f32 1.442695, %v956_v33  ;;  %v957_v36 = vsub.f32 %v946_v15, %v955_v34 }
 0x458   : > { %v960_v37 = vmul.f32 1.442695, %v957_v36  ;;  %1596 = vpow2.f32 %v958_v35 }
 0x459   : > { %v695_v38 = vpop.xlane.xlu1 %694 }
 0x45a   : > { %v1593_v40 = vpop.eup %1592  ;;  %1598 = vpow2.f32 %v960_v37  ;;  %v699_v41 = vsub.f32 %v686_v18, %v695_v38  ;;  %v698_v39 = vpop.xlane.xlu0 %697  ;;  %v1582_v18 = vld [vmem:[#allocation8 + $0x10] sm:$0xff]  }
 0x45b   : > { %v700_v42 = vsub.f32 %v689_v21, %v698_v39  ;;  %v882_v43 = vsel %vm570_vm2, %v1593_v40, 0.0  ;;  %1450 = vmatpush3.bf16.msra.mxu0 %v1582_v18  ;;  %v1586_v37 = vld [vmem:[#allocation8 + $0x30] sm:$0xff]  }
 0x45c   : > { %v701_v44 = vmul.f32 1.442695, %v699_v41  ;;  %883 = vadd.xlane.f32.xlu0 %v882_v43  ;;  %1451 = vmatprep.subr.bf16.mxu0 %v1793_v1  ;;  %v1587_v41 = vld [vmem:[#allocation8 + $0x38] sm:$0xff]  }
 0x45d   : > { %v703_v45 = vmul.f32 1.442695, %v700_v42  ;;  %v836_v58 = vpop.permute.xlu1 %835 }
 0x45e   : > { %v1595_v46 = vpop.eup %1594  ;;  %1600 = vpow2.f32 %v701_v44  ;;  %v708_v47 = vpop.permute.xlu0 %707 }
 0x45f   : > { %1602 = vpow2.f32 %v703_v45  ;;  %1416 = vmatpush3.bf16.msra.mxu1 %v708_v47  ;;  %v885_v48 = vsel %vm570_vm2, %v1595_v46, 0.0  ;;  %v834_v49 = vpack.c.bf16 %v1595_v46, %v1593_v40  ;;  %1452 = vmatpush3.bf16.msra.mxu0 %v1583_v19 }
 0x460   : > { %886 = vadd.xlane.f32.xlu0 %v885_v48  ;;  %1427 = vmatprep.subr.bf16.mxu1 %v1793_v1 }
 0x461   : > { %v964_v2 = vpop.permute.xlu1 %963  ;;  %1453 = vmatprep.subr.bf16.mxu0 %v1793_v1 }
 0x462   : > { %v1597_v50 = vpop.eup %1596 }
 0x463   : > { %v1010_v62 = vsel %vm570_vm2, %v1597_v50, 0.0  ;;  %1454 = vmatpush3.bf16.msra.mxu0 %v1584_v25 }
 0x464   : > { %v1599_v51 = vpop.eup %1598  ;;  %1455 = vmatprep.subr.bf16.mxu0 %v1793_v1 }
 0x465   : > { %v962_v52 = vpack.c.bf16 %v1599_v51, %v1597_v50  ;;  %v1013_v59 = vsel %vm570_vm2, %v1599_v51, 0.0 }
 0x467   : > { %1456 = vmatpush3.bf16.msra.mxu0 %v1585_v29 }
 0x468   : > { %v1601_v53 = vpop.eup %1600  ;;  %1457 = vmatprep.subr.bf16.mxu0 %v1793_v1 }
 0x469   : > { %v1603_v54 = vpop.eup %1602  ;;  %v754_v55 = vsel %vm570_vm2, %v1601_v53, 0.0 }
 0x46a   : > { %755 = vadd.xlane.f32.xlu0 %v754_v55  ;;  %v757_v56 = vsel %vm570_vm2, %v1603_v54, 0.0  ;;  %v705_v57 = vpack.c.bf16 %v1603_v54, %v1601_v53 }
 0x46b   : > { %758 = vadd.xlane.f32.xlu1 %v757_v56  ;;  %1458 = vmatpush3.bf16.msra.mxu0 %v1586_v37 }
 0x46c   : > { %1418 = vmatmul.mubr.msk.bf16.vlgmr.msra.gmra.mrb[16].mxu1 %vm570_vm2, %v705_v57  ;;  %1459 = vmatprep.subr.bf16.mxu0 %v1793_v1 }
 0x46d   : > { %1428 = vmatpush3.bf16.msra.mxu1 %v836_v58  ;;  %1429 = vmatprep.mubr.msk.bf16.mxu1 %vm1794_vm0, %v1793_v1 }
 0x46e   : > { %1014 = vadd.xlane.f32.xlu0 %v1013_v59  ;;  %1439 = vmatprep.subr.bf16.mxu1 %v1793_v1 }
 0x46f   : > { %1011 = vadd.xlane.f32.xlu1 %v1010_v62  ;;  %1460 = vmatpush3.bf16.msra.mxu0 %v1587_v41 }
 0x472   : > { %632 = vadd.xlane.f32.xlu0 %v631_v63 }
 0x473   : > { %629 = vadd.xlane.f32.xlu1 %v628_v0 }
 0x474   : > { %1430 = vmatmul.mubr.msk.bf16.vlgmr.msra.gmra.mrb[20].mxu1 %vm570_vm2, %v834_v49 }
 0x475   : > { %1440 = vmatpush3.bf16.msra.mxu1 %v964_v2  ;;  %1441 = vmatprep.mubr.msk.bf16.mxu1 %vm1794_vm0, %v1793_v1 }
 0x47c   : > { %1442 = vmatmul.mubr.msk.bf16.vlgmr.msra.gmra.mrb[24].mxu1 %vm570_vm2, %v962_v52 }
 0x4e9   : > { %v884_v61 = vpop.xlane.xlu0 %883 }
 0x4ed   : > { %v887_v60 = vpop.xlane.xlu0 %886 }
 0x4f7   : > { %v756_v5 = vpop.xlane.xlu0 %755 }
 0x4f8   : > { %v759_v6 = vpop.xlane.xlu1 %758 }
 0x4fb   : > { %v1015_v8 = vpop.xlane.xlu0 %1014 }
 0x4fc   : > { %v1012_v9 = vpop.xlane.xlu1 %1011 }
 0x4ff   : > { %v633_v11 = vpop.xlane.xlu0 %632 }
 0x500   : > { %1604 = vrcp.f32 %v633_v11  ;;  %v630_v12 = vpop.xlane.xlu1 %629 }
 0x501   : > { %1606 = vrcp.f32 %v630_v12  ;;  %v1337_v12 = vld [vmem:[%s2188_s3] ss:$0 sm:$0xff] }
 0x502   : > { %1608 = vrcp.f32 %v756_v5 }
 0x503   : > { %1610 = vrcp.f32 %v759_v6 }
 0x504   : > { %1612 = vrcp.f32 %v884_v61 }
 0x505   : > { %1614 = vrcp.f32 %v887_v60 }
 0x506   : > { %1616 = vrcp.f32 %v1012_v9 }
 0x507   : > { %1618 = vrcp.f32 %v1015_v8 }
 0x50a   : > { %v1605_v13 = vpop.eup %1604 }
 0x50b   : > { %v1607_v14 = vpop.eup %1606  ;;  %v637_v15 = vmul.f32 %v1605_v13, %v2081_v10 }
 0x50c   : > { %v636_v16 = vmul.f32 %v1607_v14, %v2078_v7  ;;  %v1609_v21 = vpop.eup %1608 }
 0x50d   : > { %v1611_v10 = vpop.eup %1610 }
 0x50e   : > { %v638_v17 = vpack.c.bf16 %v637_v15, %v636_v16  ;;  %v1613_v31 = vpop.eup %1612  ;;  %v1338_v15 = vld [vmem:[%s2189_s4] ss:$0 sm:$0xff] }
 0x50f   : > { %v1615_v35 = vpop.eup %1614 }
 0x510   : > { %639 = vst.msk [vmem:[#allocation2] sm:$0xff] %vm522_vm1, %v638_v17  ;;  %v1617_v42 = vpop.eup %1616 }
 0x511   : > { %v1619_v46 = vpop.eup %1618 }
 0x53f   : > { %v747_v20 = vpop.f32.mrb[16].mxu1 }
 0x540   : > { %v1419_v22 = vpop.f32.mrb[17].mxu1  ;;  %v762_v26 = vmul.f32 %v1609_v21, %v747_v20 }
 0x541   : > { %v750_v7 = vpop.f32.mrb[18].mxu1 }
 0x542   : > { %v763_v27 = vmul.f32 %v1611_v10, %v750_v7  ;;  %v1420_v28 = vpop.f32.mrb[19].mxu1 }
 0x544   : > { %v764_v30 = vpack.c.bf16 %v763_v27, %v762_v26 }
 0x546   : > { %766 = vrot.lane.b32.xlu1 %v764_v30, %s1797_s15 }
 0x547   : > { %v875_v32 = vpop.f32.mrb[20].mxu1 }
 0x548   : > { %v890_v33 = vmul.f32 %v1613_v31, %v875_v32  ;;  %v1431_v34 = vpop.f32.mrb[21].mxu1 }
 0x549   : > { %v878_v36 = vpop.f32.mrb[22].mxu1 }
 0x54a   : > { %v891_v38 = vmul.f32 %v1615_v35, %v878_v36  ;;  %v1432_v40 = vpop.f32.mrb[23].mxu1 }
 0x54c   : > { %v892_v39 = vpack.c.bf16 %v891_v38, %v890_v33 }
 0x54e   : > { %894 = vrot.lane.b32.xlu0 %v892_v39, %s1796_s7 }
 0x54f   : > { %v1003_v43 = vpop.f32.mrb[24].mxu1 }
 0x550   : > { %v1018_v44 = vmul.f32 %v1617_v42, %v1003_v43  ;;  %v1443_v45 = vpop.f32.mrb[25].mxu1 }
 0x551   : > { %v1006_v47 = vpop.f32.mrb[26].mxu1 }
 0x552   : > { %v1019_v48 = vmul.f32 %v1619_v46, %v1006_v47  ;;  %v1444_v49 = vpop.f32.mrb[27].mxu1 }
 0x554   : > { %v1020_v50 = vpack.c.bf16 %v1019_v48, %v1018_v44 }
 0x556   : > { %1022 = vrot.lane.b32.xlu1 %v1020_v50, %s1795_s29 }
 0x5b8   : > { %v767_v51 = vpop.permute.xlu1 %766 }
 0x5b9   : > { %770 = vst.msk [vmem:[#allocation2] sm:$0xff] %vm769_vm3, %v767_v51 }
 0x5c0   : > { %v895_v52 = vpop.permute.xlu0 %894 }
 0x5c1   : > { %898 = vst.msk [vmem:[#allocation2] sm:$0xff] %vm897_vm4, %v895_v52 }
 0x5c8   : > { %v1023_v1 = vpop.permute.xlu1 %1022 }
 0x5c9   : > { %1026 = vst.msk [vmem:[#allocation2] sm:$0xff] %vm1025_vm5, %v1023_v1 }
 0x5d0   : > { %v1027_v53 = vld [vmem:[#allocation2] sm:$0xff] }
 0x5d1   : > { %1462 = vmatmul.mubr.bf16.vlgmr.msra.gmra.mrb[12].mxu0 %v1027_v53 }
 0x6a4   : > { %v1126_v54 = vpop.f32.mrb[12].mxu0 }
 0x6a5   : > { %v1135_v55 = vadd.f32 %v1126_v54, %v2017_v23  ;;  %v1463_v56 = vpop.f32.mrb[13].mxu0 }
 0x6a6   : > { %v1129_v57 = vpop.f32.mrb[14].mxu0 }
 0x6a7   : > { %v1136_v58 = vadd.f32 %v1129_v57, %v2020_v24  ;;  %1137 = vadd.xlane.f32.xlu1 %v1135_v55  ;;  %v1464_v59 = vpop.f32.mrb[15].mxu0 }
 0x6a9   : > { %1139 = vadd.xlane.f32.xlu0 %v1136_v58 }
 0x734   : > { %v1138_v62 = vpop.xlane.xlu1 %1137 }
 0x735   : > { %v1142_v63 = vmul.f32 0.0078125, %v1138_v62 }
 0x736   : > { %v1140_v0 = vpop.xlane.xlu0 %1139 }
 0x737   : > { %v1144_v2 = vsub.f32 %v1135_v55, %v1142_v63  ;;  %v1143_v3 = vmul.f32 0.0078125, %v1140_v0 }
 0x739   : > { %v1145_v4 = vsub.f32 %v1136_v58, %v1143_v3  ;;  %v1146_v61 = vmul.f32 %v1144_v2, %v1144_v2 }
 0x73b   : > { %1148 = vadd.xlane.f32.xlu0 %v1146_v61  ;;  %v1147_v60 = vmul.f32 %v1145_v4, %v1145_v4 }
 0x73d   : > { %1150 = vadd.xlane.f32.xlu1 %v1147_v60 }
 0x7c8   : > { %v1149_v5 = vpop.xlane.xlu0 %1148 }
 0x7c9   : > { %v1152_v23 = vmul.f32 0.0078125, %v1149_v5 }
 0x7ca   : > { %v1151_v6 = vpop.xlane.xlu1 %1150 }
 0x7cb   : > { %v1154_v8 = vadd.f32 1e-05, %v1152_v23  ;;  %v1153_v24 = vmul.f32 0.0078125, %v1151_v6 }
 0x7cd   : > { %1620 = vrsqrt.f32 %v1154_v8  ;;  %v1155_v9 = vadd.f32 1e-05, %v1153_v24 }
 0x7cf   : > { %1622 = vrsqrt.f32 %v1155_v9 }
 0x7d7   : > { %v1621_v11 = vpop.eup %1620 }
 0x7d8   : > { %v1158_v13 = vmul.f32 %v1621_v11, %v1144_v2 }
 0x7d9   : > { %v1623_v14 = vpop.eup %1622 }
 0x7da   : > { %v1167_v16 = vmul.f32 %v1337_v12, %v1158_v13  ;;  %v1159_v17 = vmul.f32 %v1623_v14, %v1145_v4 }
 0x7dc   : > { %v1176_v18 = vadd.f32 %v1338_v15, %v1167_v16  ;;  %v1168_v19 = vmul.f32 %v1337_v12, %v1159_v17 }
 0x7de   : > { %v1177_v20 = vadd.f32 %v1338_v15, %v1168_v19  ;;  %1178 = vst [vmem:[%s270_s17] sm:$0xff] %v1176_v18 }
 0x7e0   : > { %1179 = vst [vmem:[%s270_s17 + $0x8] sm:$0xff] %v1177_v20 }
 0x7e1   : > { %1723 = shalt.err (!%p1720_p5)
}
 0x7e2   : > { %s1724_s29 = scalar_lea.hbm %s2139_s26, 256  ;;  %s1728_s28 = scalar_lea.hbm %s2190_s5, 512 }
 0x7e3   : > { %p1725_p11 = scmp.ne.s32.totalorder %s2139_s26, %s1724_s29  ;;  %p1729_p6 = scmp.lt.u32.totalorder %s2139_s26, %s2190_s5 }
 0x7e4   : > { %p1730_p2 = scmp.lt.u32.totalorder %s1728_s28, %s1724_s29  ;;  %p1732_p7 = scmp.lt.u32.totalorder %s1724_s29, %s2139_s26 }
 0x7e5   : > { %p1726_p12 = pnand %p1725_p11, %p2213_p9 }
 0x7e6   : > { %p1731_p13 = por %p1730_p2, %p1729_p6 }
 0x7e7   : > { %p1727_p3 = pneg %p1726_p12 }
 0x7e8   : > { %p1733_p10 = por %p1732_p7, %p1731_p13 }
 0x7ea   : > { %p1734_p1 = pnand %p1733_p10, %p1727_p3 }
 0x7ec   : > { %1737 = shalt.err (!%p1734_p1)
}
 0x7ed   : > { %s1799_s14 = smov 128   ;;  %s1800_s16 = smov 256  }
 0x7ee   : > { %s1801_s17 = smov 8  }
 0x7ef   : > { %1475 = dma.vmem_to_hbm [thread:$0]  (%p2213_p9), %s2141_s23, 256, %s2139_s26, %s1181_s22, %s1799_s14, %s1800_s16, %s1801_s17  }
 0x7f0 PF: > { %s1208_s25 = sand.u32 1, %s1768_s18   ;;  %p2214_p0 = scmp.ne.s32.totalorder %s2201_s6, 0 }
 0x7f1   : > { %p2215_p4 = scmp.ge.s32.totalorder %s1780_s21, 2  ;;  %s1209_s1 = scalar_lea.sflag [#allocation5], %s1208_s25 }
 0x7f3   : > { %p1489_p8 = pnand %p2215_p4, %p2214_p0 }
 0x7f5   : > { %1763 = dma.done.wait (!%p1489_p8), %s1209_s1, 256  }
 0x7f6   : > { %1765 = vsyncadd (!%p1489_p8), %s1209_s1, 4294967040  ;;  %s2216_s9 = sld [smem:[#allocation13_spill]]  ;;  %p19_p5 = scmp.ge.s32.totalorder %s1857_s24, 4  }
 0x7f7   : > { %s2217_s18 = smov %s1772_s19  ;;  %s2218_s19 = smov %s1776_s20 }
 0x7f8   : > { %s2220_s21 = smov %s1857_s24  ;;  %21 = sbr.rel (!%p19_p5) target bundleno = 8 (0x8), region = 93 }
 0x7fc   : > { %s2219_s20 = smov %s2216_s9 }
 0x7ff   :  { %1214 = vsyncpa [#allocation4], 1 }
 0x800   :  { %1216 = vsyncpa [#allocation4 + $0x1], 1 }
 0x801   :  { %1217 = vsyncpa [#allocation7], 1 }
 0x802   :  { %1218 = vsyncpa [#allocation5], 1 }
 0x803   :  { %1220 = vsyncpa [#allocation5 + $0x1], 1 }

</bundles_post_ra>
